<compile_context>
chip_gen: v7x
topology: tpu7x:2x2x1
jax: 0.10.0
libtpu: 0.0.40
codegen_flags: <defaults>
</compile_context>

<pallas_src>
import jax
import jax.numpy as jnp
from jax.experimental import pallas as pl
from jax.experimental.pallas import tpu as pltpu


def _round_up(n, m):
    return ((n + m - 1) // m) * m


def _rnd_kernel(x_ref, w1_ref, b1_ref, w2_ref, b2_ref, out_ref):
    # Layer 1 of BOTH networks in a single MXU call:
    #   W1 = [wt1 | wp1] : (D, 2H),  b1 = [bt1 | bp1] : (1, 2H)
    x = x_ref[...].astype(w1_ref.dtype)                    # bf16 operand for MXU
    h = jnp.dot(x, w1_ref[...], preferred_element_type=jnp.float32)
    h = jnp.maximum(h + b1_ref[...], 0.0)                  # f32 bias + ReLU (VPU)

    # Layer 2 fused into the (pred - target) difference:
    #   W2 = [[-wt2], [wp2]] : (2H, H),  b2 = bp2 - bt2 : (1, H)
    #   diff = hp @ wp2 - ht @ wt2 + (bp2 - bt2)   (one K=2H MXU call)
    diff = jnp.dot(h.astype(w2_ref.dtype), w2_ref[...],
                   preferred_element_type=jnp.float32) + b2_ref[...]

    # Per-row MSE (reduction='none' then mean over dim=1), f32 on the VPU.
    out_ref[...] = jnp.mean(diff * diff, axis=1, keepdims=True)


def pack_params(params, compute_dtype=jnp.bfloat16):
    """Fuse the four Linear layers (target+predictor) into two matmul operands."""
    w1 = jnp.concatenate([params["wt1"], params["wp1"]], axis=1).astype(compute_dtype)
    b1 = jnp.concatenate([params["bt1"], params["bp1"]], axis=1).astype(jnp.float32)
    # h columns are [target | predictor], so stack rows as [-wt2 ; wp2].
    w2 = jnp.concatenate([-params["wt2"], params["wp2"]], axis=0).astype(compute_dtype)
    b2 = (params["bp2"] - params["bt2"]).astype(jnp.float32)
    return w1, b1, w2, b2


def _choose_tiling(B, D, H, bm_req, vmem_budget):
    """Pick (bm, B_pad): minimize padding waste, keep >=2 steps for megacore
    when the batch allows it, and stay inside the VMEM budget."""
    B128 = _round_up(max(B, 1), 128)
    bm_req = max(128, _round_up(bm_req, 128))

    g = pl.cdiv(B128, bm_req)
    bm = _round_up(pl.cdiv(B128, g), 128)

    # Prefer >= 2 grid steps (v7x has 2 TensorCores; batch axis is "parallel").
    if g == 1 and bm > 128:
        bm = _round_up(pl.cdiv(B128, 2), 128)

    def vmem_est(bm_):
        return (2 * bm_ * D * 4                         # x tile, f32, double-buffered
                + 2 * bm_ * 4                           # out tile, f32, double-buffered
                + 2 * (D * 2 * H + 2 * H * H) * 2       # fused weights, bf16
                + 2 * (2 * H + H) * 4                   # fused biases, f32
                + bm_ * H * 16)                         # h (f32+bf16) + diff (f32) temps

    while bm > 128 and vmem_est(bm) > vmem_budget:
        bm -= 128

    g = pl.cdiv(B128, bm)
    return bm, g * bm


def rnd_forward_packed(x, w1, b1, w2, b2, *, bm=512):
    B, D = x.shape
    H2, H = w2.shape          # (2*H, H)

    vmem_limit = 32 * 1024 * 1024   # safe on v5e/v6e (128 MiB) and v7x (64 MiB)
    bm, B_pad = _choose_tiling(B, D, H, bm, vmem_budget=int(0.85 * vmem_limit))

    if B_pad != B:
        # Tail handling: pad with zero rows, slice the result back to B below.
        x = jnp.pad(x, ((0, B_pad - B), (0, 0)))

    grid = (B_pad // bm,)

    flops = 2 * B_pad * (D * H2 + H2 * H) + 5 * B_pad * H2
    bytes_accessed = (B_pad * D * 4 + (D * H2 + H2 * H) * 2
                      + (H2 + H) * 4 + B_pad * 4)
    cost = pl.CostEstimate(flops=flops, transcendentals=0,
                           bytes_accessed=bytes_accessed)

    out = pl.pallas_call(
        _rnd_kernel,
        out_shape=jax.ShapeDtypeStruct((B_pad, 1), jnp.float32),
        grid_spec=pltpu.PrefetchScalarGridSpec(
            num_scalar_prefetch=0,
            grid=grid,
            in_specs=[
                pl.BlockSpec((bm, D), lambda i: (i, 0)),
                # Weights/biases: full-array blocks with constant index maps ->
                # DMA'd once, resident in VMEM for the whole grid.
                pl.BlockSpec((D, H2), lambda i: (0, 0)),
                pl.BlockSpec((1, H2), lambda i: (0, 0)),
                pl.BlockSpec((H2, H), lambda i: (0, 0)),
                pl.BlockSpec((1, H), lambda i: (0, 0)),
            ],
            out_specs=pl.BlockSpec((bm, 1), lambda i: (i, 0)),
        ),
        compiler_params=pltpu.CompilerParams(
            dimension_semantics=("parallel",),
            vmem_limit_bytes=vmem_limit,
        ),
        cost_estimate=cost,
    )(x, w1, b1, w2, b2)

    return out[:B, 0]


def rnd_forward(x, params, *, bm=512, compute_dtype=jnp.bfloat16):
    """x: (B, D) float32. params: dict of (in,out) f32 weights and (1,H) f32 biases."""
    w1, b1, w2, b2 = pack_params(params, compute_dtype)
    return rnd_forward_packed(x, w1, b1, w2, b2, bm=bm)


def init_params(key, input_dim, hidden_dim):
    """Deterministic PyTorch-style Linear init: U(-1/sqrt(fan_in), 1/sqrt(fan_in)).
    Weights stored as (in, out)."""
    ks = jax.random.split(key, 8)

    def lin(kw, kb, fan_in, fan_out):
        bound = 1.0 / jnp.sqrt(fan_in)
        w = jax.random.uniform(kw, (fan_in, fan_out), jnp.float32, -bound, bound)
        b = jax.random.uniform(kb, (1, fan_out), jnp.float32, -bound, bound)
        return w, b

    wt1, bt1 = lin(ks[0], ks[1], input_dim, hidden_dim)
    wt2, bt2 = lin(ks[2], ks[3], hidden_dim, hidden_dim)
    wp1, bp1 = lin(ks[4], ks[5], input_dim, hidden_dim)
    wp2, bp2 = lin(ks[6], ks[7], hidden_dim, hidden_dim)
    return dict(wt1=wt1, bt1=bt1, wt2=wt2, bt2=bt2,
                wp1=wp1, bp1=bp1, wp2=wp2, bp2=bp2)


def rnd_forward_ref(x, p, compute_dtype=jnp.bfloat16):
    """Unfused reference following the PyTorch graph, same bf16 MXU numerics."""
    def mm(a, w):
        return jnp.dot(a.astype(compute_dtype), w.astype(compute_dtype),
                       preferred_element_type=jnp.float32)
    ht = jnp.maximum(mm(x, p["wt1"]) + p["bt1"], 0.0)
    t = mm(ht, p["wt2"]) + p["bt2"]
    hp = jnp.maximum(mm(x, p["wp1"]) + p["bp1"], 0.0)
    pr = mm(hp, p["wp2"]) + p["bp2"]
    return jnp.mean((pr - t) ** 2, axis=1)


if __name__ == "__main__":
    key = jax.random.PRNGKey(0)
    k_x, k_p = jax.random.split(key)

    batch = 64        # not a multiple of the batch tile -> exercises the padded tail
    input_dim = 32
    hidden_dim = 128  # small stand-in for the module's default 512

    x = jax.random.normal(k_x, (batch, input_dim), jnp.float32)
    params = init_params(k_p, input_dim, hidden_dim)

    out = rnd_forward(x, params)
    out = jax.block_until_ready(out)

    ref = rnd_forward_ref(x, params)
    assert out.shape == (batch,), out.shape
    assert jnp.allclose(out, ref, rtol=2e-2, atol=2e-3), (out, ref)

    print("KERNEL_OK")
</pallas_src>

<mosaic_0001>
module attributes {stable_mosaic.version = 11 : i64} {
  func.func @_rnd_kernel(%arg0: i32, %arg1: memref<128x32xf32, #tpu.memory_space<vmem>>, %arg2: memref<32x256xbf16, #tpu.memory_space<vmem>>, %arg3: memref<1x256xf32, #tpu.memory_space<vmem>>, %arg4: memref<256x128xbf16, #tpu.memory_space<vmem>>, %arg5: memref<1x128xf32, #tpu.memory_space<vmem>>, %arg6: memref<128x1xf32, #tpu.memory_space<vmem>>) attributes {dimension_semantics = [#tpu.dimension_semantics<parallel>], iteration_bounds = array<i64: 1>, scalar_prefetch = 0 : i64, scratch_operands = 0 : i64, tpu.core_type = #tpu.core_type<tc>, window_params = [{transform_indices = @transform_0, window_bounds = array<i64: 128, 32>}, {pipeline_mode = #tpu.pipeline_mode<synchronous>, transform_indices = @transform_1, window_bounds = array<i64: 32, 256>}, {pipeline_mode = #tpu.pipeline_mode<synchronous>, transform_indices = @transform_2, window_bounds = array<i64: 1, 256>}, {pipeline_mode = #tpu.pipeline_mode<synchronous>, transform_indices = @transform_3, window_bounds = array<i64: 256, 128>}, {pipeline_mode = #tpu.pipeline_mode<synchronous>, transform_indices = @transform_4, window_bounds = array<i64: 1, 128>}, {transform_indices = @transform_5, window_bounds = array<i64: 128, 1>}]} {
    %c0 = arith.constant 0 : index
    %c0_0 = arith.constant 0 : index
    %0 = vector.load %arg1[%c0, %c0_0] : memref<128x32xf32, #tpu.memory_space<vmem>>, vector<128x32xf32>
    %1 = arith.truncf %0 : vector<128x32xf32> to vector<128x32xbf16>
    %c0_1 = arith.constant 0 : index
    %c0_2 = arith.constant 0 : index
    %2 = vector.load %arg2[%c0_1, %c0_2] : memref<32x256xbf16, #tpu.memory_space<vmem>>, vector<32x256xbf16>
    %cst = arith.constant dense<0.000000e+00> : vector<128x256xf32>
    %3 = tpu.matmul %1, %2, %cst {dimension_numbers = #tpu.dot_dimension_numbers<[1], [0], [0], [1], [0, 0, 1, 1], [], []>} : vector<128x32xbf16>, vector<32x256xbf16>, vector<128x256xf32> -> vector<128x256xf32>
    %c0_3 = arith.constant 0 : index
    %c0_4 = arith.constant 0 : index
    %4 = vector.load %arg3[%c0_3, %c0_4] : memref<1x256xf32, #tpu.memory_space<vmem>>, vector<1x256xf32>
    %5 = vector.broadcast %4 : vector<1x256xf32> to vector<128x256xf32>
    %6 = arith.addf %3, %5 : vector<128x256xf32>
    %cst_5 = arith.constant 0.000000e+00 : f32
    %7 = vector.broadcast %cst_5 : f32 to vector<128x256xf32>
    %8 = arith.maximumf %6, %7 : vector<128x256xf32>
    %9 = arith.truncf %8 : vector<128x256xf32> to vector<128x256xbf16>
    %c0_6 = arith.constant 0 : index
    %c0_7 = arith.constant 0 : index
    %10 = vector.load %arg4[%c0_6, %c0_7] : memref<256x128xbf16, #tpu.memory_space<vmem>>, vector<256x128xbf16>
    %cst_8 = arith.constant dense<0.000000e+00> : vector<128x128xf32>
    %11 = tpu.matmul %9, %10, %cst_8 {dimension_numbers = #tpu.dot_dimension_numbers<[1], [0], [0], [1], [0, 0, 1, 1], [], []>} : vector<128x256xbf16>, vector<256x128xbf16>, vector<128x128xf32> -> vector<128x128xf32>
    %c0_9 = arith.constant 0 : index
    %c0_10 = arith.constant 0 : index
    %12 = vector.load %arg5[%c0_9, %c0_10] : memref<1x128xf32, #tpu.memory_space<vmem>>, vector<1x128xf32>
    %13 = vector.broadcast %12 : vector<1x128xf32> to vector<128x128xf32>
    %14 = arith.addf %11, %13 : vector<128x128xf32>
    %15 = arith.mulf %14, %14 : vector<128x128xf32>
    %cst_11 = arith.constant dense<0.000000e+00> : vector<128xf32>
    %16 = vector.multi_reduction <add>, %15, %cst_11 [1] : vector<128x128xf32> to vector<128xf32>
    %17 = vector.shape_cast %16 : vector<128xf32> to vector<128x1xf32>
    %cst_12 = arith.constant 1.280000e+02 : f32
    %18 = vector.broadcast %cst_12 : f32 to vector<128x1xf32>
    %19 = arith.divf %17, %18 : vector<128x1xf32>
    %c0_13 = arith.constant 0 : index
    %c0_14 = arith.constant 0 : index
    %20 = vector.load %arg6[%c0_13, %c0_14] : memref<128x1xf32, #tpu.memory_space<vmem>>, vector<128x1xf32>
    tpu.vector_store %arg6[%c0_13, %c0_14], %19 {strides = array<i32>} : memref<128x1xf32, #tpu.memory_space<vmem>>, vector<128x1xf32>,
    return
  }
  func.func @transform_0(%arg0: i32) -> (i32, i32) {
    %c0_i32 = arith.constant 0 : i32
    %c0_i32_0 = arith.constant 0 : i32
    return %arg0, %c0_i32 : i32, i32
  }
  func.func @transform_1(%arg0: i32) -> (i32, i32) {
    %c0_i32 = arith.constant 0 : i32
    %c0_i32_0 = arith.constant 0 : i32
    %c0_i32_1 = arith.constant 0 : i32
    return %c0_i32, %c0_i32_0 : i32, i32
  }
  func.func @transform_2(%arg0: i32) -> (i32, i32) {
    %c0_i32 = arith.constant 0 : i32
    %c0_i32_0 = arith.constant 0 : i32
    %c0_i32_1 = arith.constant 0 : i32
    return %c0_i32, %c0_i32_0 : i32, i32
  }
  func.func @transform_3(%arg0: i32) -> (i32, i32) {
    %c0_i32 = arith.constant 0 : i32
    %c0_i32_0 = arith.constant 0 : i32
    %c0_i32_1 = arith.constant 0 : i32
    return %c0_i32, %c0_i32_0 : i32, i32
  }
  func.func @transform_4(%arg0: i32) -> (i32, i32) {
    %c0_i32 = arith.constant 0 : i32
    %c0_i32_0 = arith.constant 0 : i32
    %c0_i32_1 = arith.constant 0 : i32
    return %c0_i32, %c0_i32_0 : i32, i32
  }
  func.func @transform_5(%arg0: i32) -> (i32, i32) {
    %c0_i32 = arith.constant 0 : i32
    %c0_i32_0 = arith.constant 0 : i32
    return %arg0, %c0_i32 : i32, i32
  }
}

</mosaic_0001>

<bundles_post_ra>
// kernel: tpu_custom_call.1
= control target key start
LH: loop header
LB: loop body
LE: loop exit
PB: predicated region body
PF: predicated region fallthrough
CT: control target
= control target key end

     0   :  { %v717_v1 = vmov 0   ;;  %vm81_vm0 = vcmask 261120   ;;  %v51_v45 = vlaneseq  ;;  %vm564_vm1 = vcmask 7168   ;;  %s996_s1 = inlined_call_operand.vmem [shape: bf16[32,256], index: 1, kind: input, shape index: {}]   ;;  %s997_s0 = inlined_call_operand.vmem [shape: f32[128,32], index: 0, kind: input, shape index: {}]   ;;  %s998_s3 = inlined_call_operand.vmem [shape: bf16[256,128], index: 3, kind: input, shape index: {}]   ;;  %s999_s2 = inlined_call_operand.vmem [shape: f32[1,256], index: 2, kind: input, shape index: {}]   ;;  %s1000_s4 = inlined_call_operand.vmem [shape: f32[1,128], index: 4, kind: input, shape index: {}]   ;;  %s1001_s5 = inlined_call_operand.vmem [shape: f32[128,1], index: 5, kind: output, shape index: {}]  }
   0x1   :  { %v695_v0 = vld [vmem:[%s996_s1 + $0x4] ss:$8 sps:$4 sm:$0xff]   ;;  %138 = vmatprep.mubr.bf16.mxu0 %v717_v1  ;;  %v697_v2 = vld [vmem:[%s996_s1] ss:$8 sps:$4 sm:$0xff]   ;;  %v698_v3 = vld [vmem:[%s996_s1 + $0x14] ss:$8 sps:$4 sm:$0xff]  }
   0x2   :  { %106 = vmatprep.subr.bf16.mxu0 %v695_v0  ;;  %v700_v4 = vld [vmem:[%s996_s1 + $0x10] ss:$8 sps:$4 sm:$0xff]   ;;  %v21_v5 = vld [vmem:[%s997_s0] sm:$0xff]  ;;  %v22_v6 = vld [vmem:[%s997_s0 + $0x8] sm:$0xff]  ;;  %v52_v46 = vshrl.u32 %v51_v45, 7 }
   0x3   :  { %107 = vmatpush1.bf16.msra.mxu0 %v697_v2  ;;  %v37_v7 = vpack.c.bf16 %v22_v6, %v21_v5  ;;  %v701_v8 = vld [vmem:[%s998_s3 + $0x40] sm:$0xff]   ;;  %v23_v9 = vld [vmem:[%s997_s0 + $0x10] sm:$0xff]  ;;  %v24_v10 = vld [vmem:[%s997_s0 + $0x18] sm:$0xff] }
   0x4   :  { %108 = vmatprep.subr.bf16.mxu0 %v698_v3  ;;  %v702_v11 = vld [vmem:[%s998_s3] sm:$0xff]   ;;  %v703_v12 = vld [vmem:[%s998_s3 + $0x48] sm:$0xff]   ;;  %678 = vmatprep.subr.bf16.mxu1 %v701_v8  ;;  %v705_v14 = vld [vmem:[%s998_s3 + $0x50] sm:$0xff]   ;;  %v38_v15 = vpack.c.bf16 %v24_v10, %v23_v9  ;;  %v53_v47 = vsub.s32 0, %v52_v46  ;;  %v57_v49 = vsub.s32 1, %v52_v46 }
   0x5   :  { %v704_v13 = vld [vmem:[%s998_s3 + $0x8] sm:$0xff]   ;;  %686 = vmatpush3.bf16.msra.mxu1 %v702_v11  ;;  %v706_v16 = vld [vmem:[%s998_s3 + $0x10] sm:$0xff]   ;;  %v707_v17 = vld [vmem:[%s998_s3 + $0x58] sm:$0xff]  }
   0x6   :  { %679 = vmatprep.subr.bf16.mxu1 %v703_v12  ;;  %v25_v18 = vld [vmem:[%s997_s0 + $0x20] sm:$0xff]  ;;  %v26_v19 = vld [vmem:[%s997_s0 + $0x28] sm:$0xff]  ;;  %v708_v20 = vld [vmem:[%s998_s3 + $0x18] sm:$0xff]  }
   0x7   :  { %109 = vmatpush1.bf16.msra.mxu0 %v700_v4  ;;  %v709_v21 = vld [vmem:[%s998_s3 + $0x60] sm:$0xff]   ;;  %v39_v22 = vpack.c.bf16 %v26_v19, %v25_v18  ;;  %v711_v24 = vld [vmem:[%s998_s3 + $0x68] sm:$0xff]   ;;  %v27_v25 = vld [vmem:[%s997_s0 + $0x30] sm:$0xff] }
   0x8   :  { %614 = vmatprep.subr.bf16.mxu0 %v701_v8  ;;  %v710_v23 = vld [vmem:[%s998_s3 + $0x20] sm:$0xff]   ;;  %v28_v26 = vld [vmem:[%s997_s0 + $0x38] sm:$0xff]  ;;  %v30_v29 = vld [vmem:[%s997_s0 + $0x48] sm:$0xff] }
   0x9   :  { %687 = vmatpush3.bf16.msra.mxu1 %v704_v13  ;;  %v40_v27 = vpack.c.bf16 %v28_v26, %v27_v25  ;;  %v29_v28 = vld [vmem:[%s997_s0 + $0x40] sm:$0xff]  ;;  %v31_v31 = vld [vmem:[%s997_s0 + $0x50] sm:$0xff]  ;;  %v32_v32 = vld [vmem:[%s997_s0 + $0x58] sm:$0xff] }
   0xa   :  { %589 = vmatmul.mubr.msk.bf16.vlgmr.msra.gmra.mrb[0].mxu0 %vm81_vm0, %v37_v7  ;;  %680 = vmatprep.subr.bf16.mxu1 %v705_v14  ;;  %v41_v30 = vpack.c.bf16 %v30_v29, %v29_v28  ;;  %v42_v33 = vpack.c.bf16 %v32_v32, %v31_v31  ;;  %v33_v34 = vld [vmem:[%s997_s0 + $0x60] sm:$0xff]  ;;  %v34_v35 = vld [vmem:[%s997_s0 + $0x68] sm:$0xff]  ;;  %v35_v37 = vld [vmem:[%s997_s0 + $0x70] sm:$0xff] }
   0xb   :  { %148 = vmatprep.mubr.bf16.mxu0 %v717_v1  ;;  %615 = vmatpush3.bf16.msra.mxu0 %v702_v11  ;;  %v43_v36 = vpack.c.bf16 %v34_v35, %v33_v34  ;;  %v36_v38 = vld [vmem:[%s997_s0 + $0x78] sm:$0xff]  ;;  %v712_v40 = vld [vmem:[%s998_s3 + $0x28] sm:$0xff]   ;;  %v713_v41 = vld [vmem:[%s998_s3 + $0x70] sm:$0xff]  }
   0xc   :  { %616 = vmatprep.subr.bf16.mxu0 %v703_v12  ;;  %v44_v39 = vpack.c.bf16 %v36_v38, %v35_v37  ;;  %v714_v42 = vld [vmem:[%s998_s3 + $0x30] sm:$0xff]   ;;  %v715_v43 = vld [vmem:[%s998_s3 + $0x78] sm:$0xff]   ;;  %v49_v48 = vld [vmem:[%s999_s2] sm:$0x3] }
   0xd   :  { %688 = vmatpush3.bf16.msra.mxu1 %v706_v16  ;;  %v716_v44 = vld [vmem:[%s998_s3 + $0x38] sm:$0xff]   ;;  %v875_v50 = vrot.slane %v49_v48, %v53_v47  ;;  %v877_v51 = vrot.slane %v49_v48, %v57_v49 }
   0xe   :  { %681 = vmatprep.subr.bf16.mxu1 %v707_v17 }
   0xf   :  { %617 = vmatpush3.bf16.msra.mxu0 %v704_v13 }
  0x10   :  { %618 = vmatprep.subr.bf16.mxu0 %v705_v14 }
  0x11   :  { %689 = vmatpush3.bf16.msra.mxu1 %v708_v20 }
  0x12   :  { %590 = vmatmul.mubr.msk.bf16.gmra.mrb[4].mxu0 %vm81_vm0, %v38_v15  ;;  %682 = vmatprep.subr.bf16.mxu1 %v709_v21 }
  0x13   :  { %158 = vmatprep.mubr.bf16.mxu0 %v717_v1  ;;  %619 = vmatpush3.bf16.msra.mxu0 %v706_v16 }
  0x14   :  { %620 = vmatprep.subr.bf16.mxu0 %v707_v17 }
  0x15   :  { %690 = vmatpush3.bf16.msra.mxu1 %v710_v23 }
  0x16   :  { %683 = vmatprep.subr.bf16.mxu1 %v711_v24 }
  0x17   :  { %621 = vmatpush3.bf16.msra.mxu0 %v708_v20 }
  0x18   :  { %622 = vmatprep.subr.bf16.mxu0 %v709_v21 }
  0x19   :  { %691 = vmatpush3.bf16.msra.mxu1 %v712_v40 }
  0x1a   :  { %591 = vmatmul.mubr.msk.bf16.gmra.mrb[8].mxu0 %vm81_vm0, %v39_v22  ;;  %684 = vmatprep.subr.bf16.mxu1 %v713_v41 }
  0x1b   :  { %168 = vmatprep.mubr.bf16.mxu0 %v717_v1  ;;  %623 = vmatpush3.bf16.msra.mxu0 %v710_v23 }
  0x1c   :  { %624 = vmatprep.subr.bf16.mxu0 %v711_v24 }
  0x1d   :  { %692 = vmatpush3.bf16.msra.mxu1 %v714_v42 }
  0x1e   :  { %685 = vmatprep.subr.bf16.mxu1 %v715_v43 }
  0x1f   :  { %625 = vmatpush3.bf16.msra.mxu0 %v712_v40 }
  0x20   :  { %626 = vmatprep.subr.bf16.mxu0 %v713_v41 }
  0x21   :  { %693 = vmatpush3.bf16.msra.mxu1 %v716_v44 }
  0x22   :  { %592 = vmatmul.mubr.msk.bf16.gmra.mrb[12].mxu0 %vm81_vm0, %v40_v27 }
  0x23   :  { %178 = vmatprep.mubr.bf16.mxu0 %v717_v1  ;;  %627 = vmatpush3.bf16.msra.mxu0 %v714_v42 }
  0x24   :  { %628 = vmatprep.subr.bf16.mxu0 %v715_v43 }
  0x27   :  { %629 = vmatpush3.bf16.msra.mxu0 %v716_v44 }
  0x2a   :  { %593 = vmatmul.mubr.msk.bf16.gmra.mrb[16].mxu0 %vm81_vm0, %v41_v30 }
  0x2b   :  { %188 = vmatprep.mubr.bf16.mxu0 %v717_v1 }
  0x32   :  { %594 = vmatmul.mubr.msk.bf16.gmra.mrb[20].mxu0 %vm81_vm0, %v42_v33 }
  0x33   :  { %198 = vmatprep.mubr.bf16.mxu0 %v717_v1 }
  0x3a   :  { %595 = vmatmul.mubr.msk.bf16.gmra.mrb[24].mxu0 %vm81_vm0, %v43_v36 }
  0x3b   :  { %208 = vmatprep.mubr.bf16.mxu0 %v717_v1 }
  0x42   :  { %596 = vmatmul.mubr.msk.bf16.gmra.mrb[28].mxu0 %vm81_vm0, %v44_v39 }
  0xdd   :  { %v140_v52 = vpop.f32.mrb[0].mxu0 }
  0xde   :  { %v141_v53 = vadd.f32 %v140_v52, %v875_v50  ;;  %v142_v54 = vpop.f32.mrb[1].mxu0 }
  0xdf   :  { %v143_v55 = vadd.f32 %v142_v54, %v877_v51  ;;  %v144_v56 = vpop.f32.mrb[2].mxu0 }
  0xe0   :  { %v145_v57 = vadd.f32 %v144_v56, %v875_v50  ;;  %v146_v58 = vpop.f32.mrb[3].mxu0  ;;  %v219_v60 = vmax.f32 %v141_v53, 0.0 }
  0xe1   :  { %v147_v59 = vadd.f32 %v146_v58, %v877_v51  ;;  %v220_v62 = vmax.f32 %v143_v55, 0.0 }
  0xe2   :  { %v221_v61 = vmax.f32 %v145_v57, 0.0 }
  0xe3   :  { %v222_v63 = vmax.f32 %v147_v59, 0.0 }
  0xe4   :  { %v251_v0 = vpack.c.bf16 %v221_v61, %v219_v60 }
  0xe5   :  { %v252_v1 = vpack.c.bf16 %v222_v63, %v220_v62  ;;  %v150_v2 = vpop.f32.mrb[4].mxu0 }
  0xe6   :  { %v151_v3 = vadd.f32 %v150_v2, %v875_v50  ;;  %v152_v4 = vpop.f32.mrb[5].mxu0 }
  0xe7   :  { %v153_v5 = vadd.f32 %v152_v4, %v877_v51  ;;  %v154_v6 = vpop.f32.mrb[6].mxu0  ;;  %434 = vmatprep.mubr.bf16.mxu0 %v252_v1 }
  0xe8   :  { %v155_v7 = vadd.f32 %v154_v6, %v875_v50  ;;  %v156_v8 = vpop.f32.mrb[7].mxu0  ;;  %435 = vmatmul.mubr.bf16.vlgmr.msra.gmra.mrb[32].mxu0 %v251_v0  ;;  %v223_v10 = vmax.f32 %v151_v3, 0.0 }
  0xe9   :  { %v157_v9 = vadd.f32 %v156_v8, %v877_v51  ;;  %v224_v12 = vmax.f32 %v153_v5, 0.0 }
  0xea   :  { %v225_v11 = vmax.f32 %v155_v7, 0.0 }
  0xeb   :  { %v226_v13 = vmax.f32 %v157_v9, 0.0 }
  0xec   :  { %v253_v14 = vpack.c.bf16 %v225_v11, %v223_v10 }
  0xed   :  { %v160_v15 = vpop.f32.mrb[8].mxu0  ;;  %v254_v16 = vpack.c.bf16 %v226_v13, %v224_v12 }
  0xee   :  { %v161_v17 = vadd.f32 %v160_v15, %v875_v50  ;;  %v162_v18 = vpop.f32.mrb[9].mxu0 }
  0xef   :  { %v163_v19 = vadd.f32 %v162_v18, %v877_v51  ;;  %v164_v20 = vpop.f32.mrb[10].mxu0  ;;  %442 = vmatprep.mubr.bf16.mxu1 %v254_v16 }
  0xf0   :  { %v165_v21 = vadd.f32 %v164_v20, %v875_v50  ;;  %v166_v22 = vpop.f32.mrb[11].mxu0  ;;  %443 = vmatmul.mubr.bf16.vlgmr.msra.gmra.mrb[0].mxu1 %v253_v14  ;;  %v227_v24 = vmax.f32 %v161_v17, 0.0 }
  0xf1   :  { %v167_v23 = vadd.f32 %v166_v22, %v877_v51  ;;  %v228_v26 = vmax.f32 %v163_v19, 0.0 }
  0xf2   :  { %v229_v25 = vmax.f32 %v165_v21, 0.0 }
  0xf3   :  { %v230_v27 = vmax.f32 %v167_v23, 0.0 }
  0xf4   :  { %v255_v28 = vpack.c.bf16 %v229_v25, %v227_v24 }
  0xf5   :  { %v256_v29 = vpack.c.bf16 %v230_v27, %v228_v26  ;;  %v170_v30 = vpop.f32.mrb[12].mxu0 }
  0xf6   :  { %v171_v31 = vadd.f32 %v170_v30, %v875_v50  ;;  %v172_v32 = vpop.f32.mrb[13].mxu0 }
  0xf7   :  { %v173_v33 = vadd.f32 %v172_v32, %v877_v51  ;;  %v174_v34 = vpop.f32.mrb[14].mxu0  ;;  %450 = vmatprep.mubr.bf16.mxu1 %v256_v29 }
  0xf8   :  { %v175_v35 = vadd.f32 %v174_v34, %v875_v50  ;;  %v176_v36 = vpop.f32.mrb[15].mxu0  ;;  %451 = vmatmul.mubr.bf16.gmra.mrb[4].mxu1 %v255_v28  ;;  %v231_v38 = vmax.f32 %v171_v31, 0.0 }
  0xf9   :  { %v177_v37 = vadd.f32 %v176_v36, %v877_v51  ;;  %v232_v40 = vmax.f32 %v173_v33, 0.0 }
  0xfa   :  { %v233_v39 = vmax.f32 %v175_v35, 0.0 }
  0xfb   :  { %v234_v41 = vmax.f32 %v177_v37, 0.0 }
  0xfc   :  { %v257_v42 = vpack.c.bf16 %v233_v39, %v231_v38 }
  0xfd   :  { %v258_v43 = vpack.c.bf16 %v234_v41, %v232_v40  ;;  %v180_v44 = vpop.f32.mrb[16].mxu0  ;;  %v914_v40 = vld [vmem:[%s1000_s4] ss:$0 sm:$0xff] }
  0xfe   :  { %v181_v45 = vadd.f32 %v180_v44, %v875_v50  ;;  %v182_v46 = vpop.f32.mrb[17].mxu0 }
  0xff   :  { %v183_v47 = vadd.f32 %v182_v46, %v877_v51  ;;  %v184_v48 = vpop.f32.mrb[18].mxu0  ;;  %458 = vmatprep.mubr.bf16.mxu1 %v258_v43 }
 0x100   :  { %v185_v49 = vadd.f32 %v184_v48, %v875_v50  ;;  %v186_v52 = vpop.f32.mrb[19].mxu0  ;;  %459 = vmatmul.mubr.bf16.gmra.mrb[8].mxu1 %v257_v42  ;;  %v235_v54 = vmax.f32 %v181_v45, 0.0 }
 0x101   :  { %v187_v53 = vadd.f32 %v186_v52, %v877_v51  ;;  %v236_v56 = vmax.f32 %v183_v47, 0.0 }
 0x102   :  { %v237_v55 = vmax.f32 %v185_v49, 0.0 }
 0x103   :  { %v238_v57 = vmax.f32 %v187_v53, 0.0 }
 0x104   :  { %v259_v58 = vpack.c.bf16 %v237_v55, %v235_v54 }
 0x105   :  { %v260_v59 = vpack.c.bf16 %v238_v57, %v236_v56  ;;  %v190_v60 = vpop.f32.mrb[20].mxu0 }
 0x106   :  { %v191_v61 = vadd.f32 %v190_v60, %v875_v50  ;;  %v192_v62 = vpop.f32.mrb[21].mxu0 }
 0x107   :  { %v193_v63 = vadd.f32 %v192_v62, %v877_v51  ;;  %v194_v0 = vpop.f32.mrb[22].mxu0  ;;  %466 = vmatprep.mubr.bf16.mxu1 %v260_v59 }
 0x108   :  { %v195_v1 = vadd.f32 %v194_v0, %v875_v50  ;;  %v196_v2 = vpop.f32.mrb[23].mxu0  ;;  %467 = vmatmul.mubr.bf16.gmra.mrb[12].mxu1 %v259_v58  ;;  %v239_v4 = vmax.f32 %v191_v61, 0.0 }
 0x109   :  { %v197_v3 = vadd.f32 %v196_v2, %v877_v51  ;;  %v240_v6 = vmax.f32 %v193_v63, 0.0 }
 0x10a   :  { %v241_v5 = vmax.f32 %v195_v1, 0.0 }
 0x10b   :  { %v242_v7 = vmax.f32 %v197_v3, 0.0 }
 0x10c   :  { %v261_v8 = vpack.c.bf16 %v241_v5, %v239_v4 }
 0x10d   :  { %v262_v9 = vpack.c.bf16 %v242_v7, %v240_v6  ;;  %v200_v10 = vpop.f32.mrb[24].mxu0 }
 0x10e   :  { %v201_v11 = vadd.f32 %v200_v10, %v875_v50  ;;  %v202_v12 = vpop.f32.mrb[25].mxu0 }
 0x10f   :  { %v203_v13 = vadd.f32 %v202_v12, %v877_v51  ;;  %v204_v14 = vpop.f32.mrb[26].mxu0  ;;  %474 = vmatprep.mubr.bf16.mxu1 %v262_v9 }
 0x110   :  { %v205_v15 = vadd.f32 %v204_v14, %v875_v50  ;;  %v206_v16 = vpop.f32.mrb[27].mxu0  ;;  %475 = vmatmul.mubr.bf16.gmra.mrb[16].mxu1 %v261_v8  ;;  %v243_v18 = vmax.f32 %v201_v11, 0.0 }
 0x111   :  { %v207_v17 = vadd.f32 %v206_v16, %v877_v51  ;;  %v244_v20 = vmax.f32 %v203_v13, 0.0 }
 0x112   :  { %v245_v19 = vmax.f32 %v205_v15, 0.0 }
 0x113   :  { %v246_v21 = vmax.f32 %v207_v17, 0.0 }
 0x114   :  { %v263_v22 = vpack.c.bf16 %v245_v19, %v243_v18 }
 0x115   :  { %v264_v23 = vpack.c.bf16 %v246_v21, %v244_v20  ;;  %v210_v24 = vpop.f32.mrb[28].mxu0 }
 0x116   :  { %v211_v25 = vadd.f32 %v210_v24, %v875_v50  ;;  %v212_v26 = vpop.f32.mrb[29].mxu0 }
 0x117   :  { %v213_v27 = vadd.f32 %v212_v26, %v877_v51  ;;  %v214_v28 = vpop.f32.mrb[30].mxu0  ;;  %482 = vmatprep.mubr.bf16.mxu1 %v264_v23 }
 0x118   :  { %v215_v29 = vadd.f32 %v214_v28, %v875_v50  ;;  %v216_v30 = vpop.f32.mrb[31].mxu0  ;;  %483 = vmatmul.mubr.bf16.gmra.mrb[20].mxu1 %v263_v22  ;;  %v247_v32 = vmax.f32 %v211_v25, 0.0 }
 0x119   :  { %v217_v31 = vadd.f32 %v216_v30, %v877_v51  ;;  %v248_v34 = vmax.f32 %v213_v27, 0.0 }
 0x11a   :  { %v249_v33 = vmax.f32 %v215_v29, 0.0 }
 0x11b   :  { %v250_v35 = vmax.f32 %v217_v31, 0.0 }
 0x11c   :  { %v265_v36 = vpack.c.bf16 %v249_v33, %v247_v32 }
 0x11d   :  { %v266_v37 = vpack.c.bf16 %v250_v35, %v248_v34 }
 0x11f   :  { %490 = vmatprep.mubr.bf16.mxu1 %v266_v37 }
 0x120   :  { %491 = vmatmul.mubr.bf16.gmra.mrb[24].mxu1 %v265_v36 }
 0x1bb   :  { %v630_v38 = vpop.f32.mrb[32].mxu0 }
 0x1bc   :  { %v631_v39 = vpop.f32.mrb[33].mxu0 }
 0x1bd   :  { %v632_v50 = vadd.f32 %v631_v39, %v630_v38  ;;  %v633_v41 = vpop.f32.mrb[34].mxu0 }
 0x1be   :  { %v634_v42 = vpop.f32.mrb[35].mxu0 }
 0x1bf   :  { %v635_v43 = vadd.f32 %v634_v42, %v633_v41  ;;  %v437_v51 = vadd.f32 %v632_v50, %v914_v40 }
 0x1c1   :  { %v499_v44 = vmul.f32 %v437_v51, %v437_v51  ;;  %v440_v45 = vadd.f32 %v635_v43, %v914_v40 }
 0x1c3   :  { %v636_v46 = vpop.f32.mrb[0].mxu1  ;;  %515 = vadd.xlane.f32.xlu0 %v499_v44  ;;  %v500_v52 = vmul.f32 %v440_v45, %v440_v45 }
 0x1c4   :  { %v637_v47 = vpop.f32.mrb[1].mxu1 }
 0x1c5   :  { %v638_v48 = vadd.f32 %v637_v47, %v636_v46  ;;  %v639_v49 = vpop.f32.mrb[2].mxu1 }
 0x1c6   :  { %v640_v53 = vpop.f32.mrb[3].mxu1 }
 0x1c7   :  { %v641_v54 = vadd.f32 %v640_v53, %v639_v49  ;;  %517 = vadd.xlane.f32.xlu0 %v500_v52  ;;  %v445_v55 = vadd.f32 %v638_v48, %v914_v40 }
 0x1c9   :  { %v501_v56 = vmul.f32 %v445_v55, %v445_v55  ;;  %v448_v57 = vadd.f32 %v641_v54, %v914_v40 }
 0x1cb   :  { %v642_v58 = vpop.f32.mrb[4].mxu1  ;;  %519 = vadd.xlane.f32.xlu1 %v501_v56  ;;  %v502_v62 = vmul.f32 %v448_v57, %v448_v57 }
 0x1cc   :  { %v643_v59 = vpop.f32.mrb[5].mxu1 }
 0x1cd   :  { %v644_v60 = vadd.f32 %v643_v59, %v642_v58  ;;  %v645_v61 = vpop.f32.mrb[6].mxu1 }
 0x1ce   :  { %v646_v63 = vpop.f32.mrb[7].mxu1 }
 0x1cf   :  { %v647_v0 = vadd.f32 %v646_v63, %v645_v61  ;;  %521 = vadd.xlane.f32.xlu1 %v502_v62  ;;  %v453_v1 = vadd.f32 %v644_v60, %v914_v40 }
 0x1d1   :  { %v503_v2 = vmul.f32 %v453_v1, %v453_v1  ;;  %v456_v3 = vadd.f32 %v647_v0, %v914_v40 }
 0x1d3   :  { %v648_v4 = vpop.f32.mrb[8].mxu1  ;;  %523 = vadd.xlane.f32.xlu0 %v503_v2  ;;  %v504_v5 = vmul.f32 %v456_v3, %v456_v3 }
 0x1d4   :  { %v649_v6 = vpop.f32.mrb[9].mxu1 }
 0x1d5   :  { %v650_v7 = vadd.f32 %v649_v6, %v648_v4  ;;  %v651_v8 = vpop.f32.mrb[10].mxu1  ;;  %525 = vadd.xlane.f32.xlu1 %v504_v5 }
 0x1d6   :  { %v652_v9 = vpop.f32.mrb[11].mxu1 }
 0x1d7   :  { %v653_v10 = vadd.f32 %v652_v9, %v651_v8  ;;  %v461_v11 = vadd.f32 %v650_v7, %v914_v40 }
 0x1d9   :  { %v505_v12 = vmul.f32 %v461_v11, %v461_v11  ;;  %v464_v13 = vadd.f32 %v653_v10, %v914_v40 }
 0x1db   :  { %v654_v14 = vpop.f32.mrb[12].mxu1  ;;  %527 = vadd.xlane.f32.xlu0 %v505_v12  ;;  %v506_v15 = vmul.f32 %v464_v13, %v464_v13 }
 0x1dc   :  { %v655_v16 = vpop.f32.mrb[13].mxu1 }
 0x1dd   :  { %v656_v17 = vadd.f32 %v655_v16, %v654_v14  ;;  %v657_v18 = vpop.f32.mrb[14].mxu1  ;;  %529 = vadd.xlane.f32.xlu1 %v506_v15 }
 0x1de   :  { %v658_v19 = vpop.f32.mrb[15].mxu1 }
 0x1df   :  { %v659_v20 = vadd.f32 %v658_v19, %v657_v18  ;;  %v469_v21 = vadd.f32 %v656_v17, %v914_v40 }
 0x1e1   :  { %v507_v22 = vmul.f32 %v469_v21, %v469_v21  ;;  %v472_v23 = vadd.f32 %v659_v20, %v914_v40 }
 0x1e3   :  { %v660_v24 = vpop.f32.mrb[16].mxu1  ;;  %531 = vadd.xlane.f32.xlu0 %v507_v22  ;;  %v508_v25 = vmul.f32 %v472_v23, %v472_v23 }
 0x1e4   :  { %v661_v26 = vpop.f32.mrb[17].mxu1 }
 0x1e5   :  { %v662_v27 = vadd.f32 %v661_v26, %v660_v24  ;;  %v663_v28 = vpop.f32.mrb[18].mxu1  ;;  %533 = vadd.xlane.f32.xlu1 %v508_v25 }
 0x1e6   :  { %v664_v29 = vpop.f32.mrb[19].mxu1 }
 0x1e7   :  { %v665_v30 = vadd.f32 %v664_v29, %v663_v28  ;;  %v477_v31 = vadd.f32 %v662_v27, %v914_v40 }
 0x1e9   :  { %v509_v32 = vmul.f32 %v477_v31, %v477_v31  ;;  %v480_v33 = vadd.f32 %v665_v30, %v914_v40 }
 0x1eb   :  { %v666_v34 = vpop.f32.mrb[20].mxu1  ;;  %535 = vadd.xlane.f32.xlu0 %v509_v32  ;;  %v510_v35 = vmul.f32 %v480_v33, %v480_v33 }
 0x1ec   :  { %v667_v36 = vpop.f32.mrb[21].mxu1 }
 0x1ed   :  { %v668_v37 = vadd.f32 %v667_v36, %v666_v34  ;;  %v669_v38 = vpop.f32.mrb[22].mxu1  ;;  %537 = vadd.xlane.f32.xlu1 %v510_v35 }
 0x1ee   :  { %v670_v39 = vpop.f32.mrb[23].mxu1 }
 0x1ef   :  { %v671_v50 = vadd.f32 %v670_v39, %v669_v38  ;;  %v485_v41 = vadd.f32 %v668_v37, %v914_v40 }
 0x1f1   :  { %v511_v42 = vmul.f32 %v485_v41, %v485_v41  ;;  %v488_v43 = vadd.f32 %v671_v50, %v914_v40 }
 0x1f3   :  { %v672_v51 = vpop.f32.mrb[24].mxu1  ;;  %539 = vadd.xlane.f32.xlu0 %v511_v42  ;;  %v512_v44 = vmul.f32 %v488_v43, %v488_v43 }
 0x1f4   :  { %v673_v45 = vpop.f32.mrb[25].mxu1 }
 0x1f5   :  { %v674_v46 = vadd.f32 %v673_v45, %v672_v51  ;;  %v675_v47 = vpop.f32.mrb[26].mxu1  ;;  %541 = vadd.xlane.f32.xlu1 %v512_v44 }
 0x1f6   :  { %v676_v48 = vpop.f32.mrb[27].mxu1 }
 0x1f7   :  { %v677_v49 = vadd.f32 %v676_v48, %v675_v47  ;;  %v493_v52 = vadd.f32 %v674_v46, %v914_v40 }
 0x1f9   :  { %v513_v53 = vmul.f32 %v493_v52, %v493_v52  ;;  %v496_v54 = vadd.f32 %v677_v49, %v914_v40 }
 0x1fb   :  { %543 = vadd.xlane.f32.xlu0 %v513_v53  ;;  %v514_v55 = vmul.f32 %v496_v54, %v496_v54 }
 0x1fd   :  { %545 = vadd.xlane.f32.xlu1 %v514_v55 }
 0x250   :  { %v516_v56 = vpop.xlane.xlu0 %515 }
 0x251   :  { %v548_v57 = vmul.f32 0.0078125, %v516_v56 }
 0x253   :  { %565 = vst.msk [vmem:[%s1001_s5] sm:$0xff] %vm564_vm1, %v548_v57 }
 0x254   :  { %v518_v58 = vpop.xlane.xlu0 %517 }
 0x255   :  { %v549_v59 = vmul.f32 0.0078125, %v518_v58 }
 0x257   :  { %566 = vst.msk [vmem:[%s1001_s5 + $0x8] sm:$0xff] %vm564_vm1, %v549_v59 }
 0x258   :  { %v520_v60 = vpop.xlane.xlu1 %519 }
 0x259   :  { %v550_v40 = vmul.f32 0.0078125, %v520_v60 }
 0x25b   :  { %567 = vst.msk [vmem:[%s1001_s5 + $0x10] sm:$0xff] %vm564_vm1, %v550_v40 }
 0x25c   :  { %v522_v61 = vpop.xlane.xlu1 %521 }
 0x25d   :  { %v551_v62 = vmul.f32 0.0078125, %v522_v61 }
 0x25f   :  { %568 = vst.msk [vmem:[%s1001_s5 + $0x18] sm:$0xff] %vm564_vm1, %v551_v62 }
 0x260   :  { %v524_v63 = vpop.xlane.xlu0 %523 }
 0x261   :  { %v552_v0 = vmul.f32 0.0078125, %v524_v63 }
 0x262   :  { %v526_v1 = vpop.xlane.xlu1 %525 }
 0x263   :  { %569 = vst.msk [vmem:[%s1001_s5 + $0x20] sm:$0xff] %vm564_vm1, %v552_v0  ;;  %v553_v2 = vmul.f32 0.0078125, %v526_v1 }
 0x265   :  { %570 = vst.msk [vmem:[%s1001_s5 + $0x28] sm:$0xff] %vm564_vm1, %v553_v2 }
 0x268   :  { %v528_v3 = vpop.xlane.xlu0 %527 }
 0x269   :  { %v554_v4 = vmul.f32 0.0078125, %v528_v3 }
 0x26a   :  { %v530_v5 = vpop.xlane.xlu1 %529 }
 0x26b   :  { %571 = vst.msk [vmem:[%s1001_s5 + $0x30] sm:$0xff] %vm564_vm1, %v554_v4  ;;  %v555_v6 = vmul.f32 0.0078125, %v530_v5 }
 0x26d   :  { %572 = vst.msk [vmem:[%s1001_s5 + $0x38] sm:$0xff] %vm564_vm1, %v555_v6 }
 0x270   :  { %v532_v7 = vpop.xlane.xlu0 %531 }
 0x271   :  { %v556_v8 = vmul.f32 0.0078125, %v532_v7 }
 0x272   :  { %v534_v9 = vpop.xlane.xlu1 %533 }
 0x273   :  { %573 = vst.msk [vmem:[%s1001_s5 + $0x40] sm:$0xff] %vm564_vm1, %v556_v8  ;;  %v557_v10 = vmul.f32 0.0078125, %v534_v9 }
 0x275   :  { %574 = vst.msk [vmem:[%s1001_s5 + $0x48] sm:$0xff] %vm564_vm1, %v557_v10 }
 0x278   :  { %v536_v11 = vpop.xlane.xlu0 %535 }
 0x279   :  { %v558_v12 = vmul.f32 0.0078125, %v536_v11 }
 0x27a   :  { %v538_v13 = vpop.xlane.xlu1 %537 }
 0x27b   :  { %575 = vst.msk [vmem:[%s1001_s5 + $0x50] sm:$0xff] %vm564_vm1, %v558_v12  ;;  %v559_v14 = vmul.f32 0.0078125, %v538_v13 }
 0x27d   :  { %576 = vst.msk [vmem:[%s1001_s5 + $0x58] sm:$0xff] %vm564_vm1, %v559_v14 }
 0x280   :  { %v540_v15 = vpop.xlane.xlu0 %539 }
 0x281   :  { %v560_v16 = vmul.f32 0.0078125, %v540_v15 }
 0x282   :  { %v542_v17 = vpop.xlane.xlu1 %541 }
 0x283   :  { %577 = vst.msk [vmem:[%s1001_s5 + $0x60] sm:$0xff] %vm564_vm1, %v560_v16  ;;  %v561_v18 = vmul.f32 0.0078125, %v542_v17 }
 0x285   :  { %578 = vst.msk [vmem:[%s1001_s5 + $0x68] sm:$0xff] %vm564_vm1, %v561_v18 }
 0x288   :  { %v544_v19 = vpop.xlane.xlu0 %543 }
 0x289   :  { %v562_v20 = vmul.f32 0.0078125, %v544_v19 }
 0x28a   :  { %v546_v21 = vpop.xlane.xlu1 %545 }
 0x28b   :  { %579 = vst.msk [vmem:[%s1001_s5 + $0x70] sm:$0xff] %vm564_vm1, %v562_v20  ;;  %v563_v22 = vmul.f32 0.0078125, %v546_v21 }
 0x28d   :  { %580 = vst.msk [vmem:[%s1001_s5 + $0x78] sm:$0xff] %vm564_vm1, %v563_v22 }

</bundles_post_ra>
